<compile_context>
chip_gen: v7x
topology: tpu7x:2x2x1
jax: 0.10.0
libtpu: 0.0.40
codegen_flags: <defaults>
</compile_context>

<pallas_src>
import functools

import jax
import jax.numpy as jnp
import numpy as np
from jax.experimental import pallas as pl
from jax.experimental.pallas import tpu as pltpu


def _round_up(x, m):
    return ((x + m - 1) // m) * m


def _snn_kernel(x_ref, whi_ref, wlo_ref, t_ref, v_sc, i_sc, drive_sc, *,
                n_steps, t_chunk, b_tile, d_in, a_m, b_m, a_s):
    """One (batch_tile, time_chunk) grid step.

    x_ref   : (t_chunk, b_tile, d_in) bf16 spikes for this chunk / batch tile
    whi_ref : (d_in, Dp)  bf16 hi part of transposed (lane-padded) weights
    wlo_ref : (d_in, Dp)  bf16 lo part (residual) of the weights
    t_ref   : (b_tile, Dp) f32 first-spike times (output, resident over time)
    v_sc, i_sc : (b_tile, Dp) f32 LIF state carried across time chunks
    drive_sc   : (t_chunk*b_tile, Dp) f32 per-chunk synaptic drive scratch
    """
    c = pl.program_id(1)

    @pl.when(c == 0)
    def _init():
        v_sc[...] = jnp.zeros_like(v_sc)
        i_sc[...] = jnp.zeros_like(i_sc)
        # sentinel == steps-1: "never spiked" already equals the final value
        t_ref[...] = jnp.full_like(t_ref, jnp.float32(n_steps))

    # Phase 1: bf16 MXU matmuls for the whole chunk (off the serial chain).
    # x is 0/1 so bf16 x is exact; hi/lo weight split keeps ~f32 fidelity.
    x2d = x_ref[...].reshape(t_chunk * b_tile, d_in)          # bf16, free merge
    drive_sc[...] = (
        jnp.dot(x2d, whi_ref[...], preferred_element_type=jnp.float32)
        + jnp.dot(x2d, wlo_ref[...], preferred_element_type=jnp.float32)
    )

    # Phase 2: pure-VALU LIF recurrence; state lives in vregs for the chunk.
    v = v_sc[...]
    i = i_sc[...]
    tfs = t_ref[...]
    base = c * t_chunk
    for local in range(t_chunk):
        drv = drive_sc[pl.ds(local * b_tile, b_tile), :]
        v_new = a_m * v + b_m * i
        i = a_s * i + drv
        spiked = v_new > 1.0
        v = jnp.where(spiked, 0.0, v_new)
        t_now = (base + local + 1).astype(jnp.float32)
        # padded steps have t_now > n_steps == sentinel -> min leaves tfs alone
        tfs = jnp.where(spiked, jnp.minimum(tfs, t_now), tfs)

    v_sc[...] = v
    i_sc[...] = i
    t_ref[...] = tfs


def snn_forward(x, weight, *, T=20, dt=1, tau_m=20.0, tau_s=5.0,
                t_chunk=None, batch_tile=None):
    """x: (T, B, Din) f32/bf16 spike train, weight: (Dout, Din) f32 -> (B, Dout) f32."""
    steps = T // dt
    Tsteps, B, Din = x.shape
    assert Tsteps == steps
    Dout = weight.shape[0]
    n_steps = steps - 1
    assert n_steps >= 1

    # ---- tiling / padding ---------------------------------------------------
    if batch_tile is None:
        Bp8 = _round_up(B, 8)
        if Bp8 >= 16:
            # >= 2 batch tiles so the "parallel" axis can use both v7x cores.
            batch_tile = min(128, _round_up(Bp8 // 2, 8))
        else:
            batch_tile = Bp8
    Bt = _round_up(batch_tile, 8)
    Bp = _round_up(B, Bt)
    nbt = Bp // Bt

    # Lane-dense output width; 256-aligned when large for the 256x256 MXU.
    Dp = 128 if Dout <= 128 else _round_up(Dout, 256)

    if t_chunk is None:
        Tc = n_steps if n_steps <= 32 else 16
    else:
        Tc = max(1, min(t_chunk, n_steps))
    num_chunks = -(-n_steps // Tc)
    T_pad = num_chunks * Tc

    # ---- input prep (no transpose; bf16 before pad) -------------------------
    # x[steps-1] is never used by the recurrence; stream only the first n_steps
    # slices, zero-padded in time/batch.  Padded rows give zero drive.
    x_used = x[:n_steps].astype(jnp.bfloat16)
    x_p = jnp.pad(x_used, ((0, T_pad - n_steps), (0, Bp - B), (0, 0)))

    # hi/lo bf16 split of the transposed, lane-padded weights.
    w_t = jnp.pad(weight.astype(jnp.float32).T, ((0, 0), (0, Dp - Dout)))
    w_hi = w_t.astype(jnp.bfloat16)
    w_lo = (w_t - w_hi.astype(jnp.float32)).astype(jnp.bfloat16)

    kernel = functools.partial(
        _snn_kernel,
        n_steps=n_steps, t_chunk=Tc, b_tile=Bt, d_in=Din,
        a_m=float(1.0 - dt / tau_m), b_m=float(dt / tau_m),
        a_s=float(1.0 - dt / tau_s),
    )

    # Scoped VMEM budget from the actual block arithmetic (+ headroom).
    vmem_bytes = (
        2 * Tc * Bt * Din * 2          # x block (double-buffered, bf16)
        + 2 * 2 * Din * Dp * 2         # w_hi + w_lo (double-buffered, bf16)
        + 2 * Bt * Dp * 4              # out block (double-buffered)
        + 2 * Bt * Dp * 4              # V, I scratch
        + Tc * Bt * Dp * 4             # drive scratch
    )
    vmem_limit = int(min(64 * 2**20, max(32 * 2**20, 2 * vmem_bytes)))

    out = pl.pallas_call(
        kernel,
        out_shape=jax.ShapeDtypeStruct((Bp, Dp), jnp.float32),
        grid_spec=pltpu.PrefetchScalarGridSpec(
            num_scalar_prefetch=0,
            grid=(nbt, num_chunks),
            in_specs=[
                # x streamed straight from (T, B, Din): block (Tc, Bt, Din).
                pl.BlockSpec((Tc, Bt, Din), lambda b, c: (c, b, 0)),
                # weights: constant block index -> fetched once, VMEM-resident.
                pl.BlockSpec((Din, Dp), lambda b, c: (0, 0)),
                pl.BlockSpec((Din, Dp), lambda b, c: (0, 0)),
            ],
            # output block constant along the time axis -> resident accumulator.
            out_specs=pl.BlockSpec((Bt, Dp), lambda b, c: (b, 0)),
            scratch_shapes=[
                pltpu.VMEM((Bt, Dp), jnp.float32),        # V
                pltpu.VMEM((Bt, Dp), jnp.float32),        # I
                pltpu.VMEM((Tc * Bt, Dp), jnp.float32),   # drive (per chunk)
            ],
        ),
        compiler_params=pltpu.CompilerParams(
            dimension_semantics=("parallel", "arbitrary"),
            vmem_limit_bytes=vmem_limit,
        ),
    )(x_p, w_hi, w_lo)

    return out[:B, :Dout]


def snn_forward_ref(x, weight, *, T=20, dt=1, tau_m=20.0, tau_s=5.0):
    """Pure-JAX reference mirroring the PyTorch EventProp forward + SpikeActivation."""
    steps = T // dt
    _, B, _ = x.shape
    Dout = weight.shape[0]
    V = jnp.zeros((B, Dout), jnp.float32)
    I = jnp.zeros((B, Dout), jnp.float32)
    tfs = jnp.full((B, Dout), -1.0, jnp.float32)
    for i in range(steps - 1):
        V = (1.0 - dt / tau_m) * V + (dt / tau_m) * I
        I = (1.0 - dt / tau_s) * I + x[i] @ weight.T
        spk = (V > 1.0).astype(jnp.float32)
        V = (1.0 - spk) * V
        tfs = jnp.where((spk > 0.0) & (tfs < 0.0), float(i + 1), tfs)
    return jnp.where(tfs < 0.0, float(steps - 1), tfs)


if __name__ == "__main__":
    T, dt = 20, 1
    tau_m, tau_s, mu = 20.0, 5.0, 0.1
    batch, input_dim, output_dim = 4, 32, 16

    key = jax.random.PRNGKey(0)
    kx, kw = jax.random.split(key)

    # binary input spike train, shape (T, batch, input_dim)
    x = jax.random.bernoulli(kx, p=0.5, shape=(T, batch, input_dim)).astype(jnp.float32)
    # nn.init.normal_(weight, mu, mu)  -> mean=0.1, std=0.1
    weight = (mu + mu * jax.random.normal(kw, (output_dim, input_dim))).astype(jnp.float32)

    out = snn_forward(x, weight, T=T, dt=dt, tau_m=tau_m, tau_s=tau_s)
    out = jax.block_until_ready(out)

    ref = snn_forward_ref(x, weight, T=T, dt=dt, tau_m=tau_m, tau_s=tau_s)
    np.testing.assert_allclose(np.asarray(out), np.asarray(ref), rtol=1e-5, atol=1e-5)

    # TODO(synk): backward (EventProp adjoint dynamics) is not part of the forward pass
    # and is intentionally not implemented.
    print("KERNEL_OK")
</pallas_src>

<mosaic_0001>
module attributes {stable_mosaic.version = 11 : i64} {
  func.func @_snn_kernel(%arg0: i32, %arg1: i32, %arg2: memref<19x8x32xbf16, #tpu.memory_space<vmem>>, %arg3: memref<32x128xbf16, #tpu.memory_space<vmem>>, %arg4: memref<32x128xbf16, #tpu.memory_space<vmem>>, %arg5: memref<8x128xf32, #tpu.memory_space<vmem>>, %arg6: memref<8x128xf32, #tpu.memory_space<vmem>>, %arg7: memref<8x128xf32, #tpu.memory_space<vmem>>, %arg8: memref<152x128xf32, #tpu.memory_space<vmem>>) attributes {dimension_semantics = [#tpu.dimension_semantics<parallel>, #tpu.dimension_semantics<arbitrary>], iteration_bounds = array<i64: 1, 1>, scalar_prefetch = 0 : i64, scratch_operands = 3 : i64, tpu.core_type = #tpu.core_type<tc>, window_params = [{transform_indices = @transform_0, window_bounds = array<i64: 19, 8, 32>}, {pipeline_mode = #tpu.pipeline_mode<synchronous>, transform_indices = @transform_1, window_bounds = array<i64: 32, 128>}, {pipeline_mode = #tpu.pipeline_mode<synchronous>, transform_indices = @transform_2, window_bounds = array<i64: 32, 128>}, {transform_indices = @transform_3, window_bounds = array<i64: 8, 128>}]} {
    %c0_i32 = arith.constant 0 : i32
    %0 = arith.cmpi eq, %arg1, %c0_i32 : i32
    %1 = arith.extui %0 : i1 to i32
    %c0_i32_0 = arith.constant 0 : i32
    %2 = arith.cmpi ne, %1, %c0_i32_0 : i32
    scf.if %2 {
      %cst_157 = arith.constant 0.000000e+00 : f32
      %379 = vector.broadcast %cst_157 : f32 to vector<8x128xf32>
      %c0_158 = arith.constant 0 : index
      %c0_159 = arith.constant 0 : index
      %380 = vector.load %arg6[%c0_158, %c0_159] : memref<8x128xf32, #tpu.memory_space<vmem>>, vector<8x128xf32>
      tpu.vector_store %arg6[%c0_158, %c0_159], %379 {strides = array<i32>} : memref<8x128xf32, #tpu.memory_space<vmem>>, vector<8x128xf32>,
      %cst_160 = arith.constant 0.000000e+00 : f32
      %381 = vector.broadcast %cst_160 : f32 to vector<8x128xf32>
      %c0_161 = arith.constant 0 : index
      %c0_162 = arith.constant 0 : index
      %382 = vector.load %arg7[%c0_161, %c0_162] : memref<8x128xf32, #tpu.memory_space<vmem>>, vector<8x128xf32>
      tpu.vector_store %arg7[%c0_161, %c0_162], %381 {strides = array<i32>} : memref<8x128xf32, #tpu.memory_space<vmem>>, vector<8x128xf32>,
      %cst_163 = arith.constant 1.900000e+01 : f32
      %383 = vector.broadcast %cst_163 : f32 to vector<8x128xf32>
      %c0_164 = arith.constant 0 : index
      %c0_165 = arith.constant 0 : index
      %384 = vector.load %arg5[%c0_164, %c0_165] : memref<8x128xf32, #tpu.memory_space<vmem>>, vector<8x128xf32>
      tpu.vector_store %arg5[%c0_164, %c0_165], %383 {strides = array<i32>} : memref<8x128xf32, #tpu.memory_space<vmem>>, vector<8x128xf32>,
    } else {
    }
    %c0 = arith.constant 0 : index
    %c0_1 = arith.constant 0 : index
    %c0_2 = arith.constant 0 : index
    %3 = vector.load %arg2[%c0, %c0_1, %c0_2] : memref<19x8x32xbf16, #tpu.memory_space<vmem>>, vector<19x8x32xbf16>
    %4 = vector.shape_cast %3 : vector<19x8x32xbf16> to vector<152x32xbf16>
    %c0_3 = arith.constant 0 : index
    %c0_4 = arith.constant 0 : index
    %5 = vector.load %arg3[%c0_3, %c0_4] : memref<32x128xbf16, #tpu.memory_space<vmem>>, vector<32x128xbf16>
    %cst = arith.constant dense<0.000000e+00> : vector<152x128xf32>
    %6 = tpu.matmul %4, %5, %cst {dimension_numbers = #tpu.dot_dimension_numbers<[1], [0], [0], [1], [0, 0, 1, 1], [], []>} : vector<152x32xbf16>, vector<32x128xbf16>, vector<152x128xf32> -> vector<152x128xf32>
    %c0_5 = arith.constant 0 : index
    %c0_6 = arith.constant 0 : index
    %7 = vector.load %arg4[%c0_5, %c0_6] : memref<32x128xbf16, #tpu.memory_space<vmem>>, vector<32x128xbf16>
    %cst_7 = arith.constant dense<0.000000e+00> : vector<152x128xf32>
    %8 = tpu.matmul %4, %7, %cst_7 {dimension_numbers = #tpu.dot_dimension_numbers<[1], [0], [0], [1], [0, 0, 1, 1], [], []>} : vector<152x32xbf16>, vector<32x128xbf16>, vector<152x128xf32> -> vector<152x128xf32>
    %9 = arith.addf %6, %8 : vector<152x128xf32>
    %c0_8 = arith.constant 0 : index
    %c0_9 = arith.constant 0 : index
    %10 = vector.load %arg8[%c0_8, %c0_9] : memref<152x128xf32, #tpu.memory_space<vmem>>, vector<152x128xf32>
    tpu.vector_store %arg8[%c0_8, %c0_9], %9 {strides = array<i32>} : memref<152x128xf32, #tpu.memory_space<vmem>>, vector<152x128xf32>,
    %c0_10 = arith.constant 0 : index
    %c0_11 = arith.constant 0 : index
    %11 = vector.load %arg6[%c0_10, %c0_11] : memref<8x128xf32, #tpu.memory_space<vmem>>, vector<8x128xf32>
    %c0_12 = arith.constant 0 : index
    %c0_13 = arith.constant 0 : index
    %12 = vector.load %arg7[%c0_12, %c0_13] : memref<8x128xf32, #tpu.memory_space<vmem>>, vector<8x128xf32>
    %c0_14 = arith.constant 0 : index
    %c0_15 = arith.constant 0 : index
    %13 = vector.load %arg5[%c0_14, %c0_15] : memref<8x128xf32, #tpu.memory_space<vmem>>, vector<8x128xf32>
    %c19_i32 = arith.constant 19 : i32
    %14 = arith.muli %arg1, %c19_i32 : i32
    %c0_16 = arith.constant 0 : index
    %c0_17 = arith.constant 0 : index
    %15 = vector.load %arg8[%c0_16, %c0_17] : memref<152x128xf32, #tpu.memory_space<vmem>>, vector<8x128xf32>
    %cst_18 = arith.constant 0.949999988 : f32
    %16 = vector.broadcast %cst_18 : f32 to vector<8x128xf32>
    %17 = arith.mulf %16, %11 : vector<8x128xf32>
    %cst_19 = arith.constant 5.000000e-02 : f32
    %18 = vector.broadcast %cst_19 : f32 to vector<8x128xf32>
    %19 = arith.mulf %18, %12 : vector<8x128xf32>
    %20 = arith.addf %17, %19 : vector<8x128xf32>
    %cst_20 = arith.constant 8.000000e-01 : f32
    %21 = vector.broadcast %cst_20 : f32 to vector<8x128xf32>
    %22 = arith.mulf %21, %12 : vector<8x128xf32>
    %23 = arith.addf %22, %15 : vector<8x128xf32>
    %cst_21 = arith.constant 1.000000e+00 : f32
    %24 = vector.broadcast %cst_21 : f32 to vector<8x128xf32>
    %25 = arith.cmpf ogt, %20, %24 : vector<8x128xf32>
    %cst_22 = arith.constant 0.000000e+00 : f32
    %26 = vector.broadcast %cst_22 : f32 to vector<8x128xf32>
    %27 = arith.select %25, %26, %20 : vector<8x128xi1>, vector<8x128xf32>
    %c0_i32_23 = arith.constant 0 : i32
    %28 = arith.addi %14, %c0_i32_23 : i32
    %c1_i32 = arith.constant 1 : i32
    %29 = arith.addi %28, %c1_i32 : i32
    %30 = arith.sitofp %29 : i32 to f32
    %31 = vector.broadcast %30 : f32 to vector<8x128xf32>
    %32 = arith.minimumf %13, %31 : vector<8x128xf32>
    %33 = arith.select %25, %32, %13 : vector<8x128xi1>, vector<8x128xf32>
    %c8 = arith.constant 8 : index
    %c0_24 = arith.constant 0 : index
    %34 = vector.load %arg8[%c8, %c0_24] : memref<152x128xf32, #tpu.memory_space<vmem>>, vector<8x128xf32>
    %cst_25 = arith.constant 0.949999988 : f32
    %35 = vector.broadcast %cst_25 : f32 to vector<8x128xf32>
    %36 = arith.mulf %35, %27 : vector<8x128xf32>
    %cst_26 = arith.constant 5.000000e-02 : f32
    %37 = vector.broadcast %cst_26 : f32 to vector<8x128xf32>
    %38 = arith.mulf %37, %23 : vector<8x128xf32>
    %39 = arith.addf %36, %38 : vector<8x128xf32>
    %cst_27 = arith.constant 8.000000e-01 : f32
    %40 = vector.broadcast %cst_27 : f32 to vector<8x128xf32>
    %41 = arith.mulf %40, %23 : vector<8x128xf32>
    %42 = arith.addf %41, %34 : vector<8x128xf32>
    %cst_28 = arith.constant 1.000000e+00 : f32
    %43 = vector.broadcast %cst_28 : f32 to vector<8x128xf32>
    %44 = arith.cmpf ogt, %39, %43 : vector<8x128xf32>
    %cst_29 = arith.constant 0.000000e+00 : f32
    %45 = vector.broadcast %cst_29 : f32 to vector<8x128xf32>
    %46 = arith.select %44, %45, %39 : vector<8x128xi1>, vector<8x128xf32>
    %c1_i32_30 = arith.constant 1 : i32
    %47 = arith.addi %14, %c1_i32_30 : i32
    %c1_i32_31 = arith.constant 1 : i32
    %48 = arith.addi %47, %c1_i32_31 : i32
    %49 = arith.sitofp %48 : i32 to f32
    %50 = vector.broadcast %49 : f32 to vector<8x128xf32>
    %51 = arith.minimumf %33, %50 : vector<8x128xf32>
    %52 = arith.select %44, %51, %33 : vector<8x128xi1>, vector<8x128xf32>
    %c16 = arith.constant 16 : index
    %c0_32 = arith.constant 0 : index
    %53 = vector.load %arg8[%c16, %c0_32] : memref<152x128xf32, #tpu.memory_space<vmem>>, vector<8x128xf32>
    %cst_33 = arith.constant 0.949999988 : f32
    %54 = vector.broadcast %cst_33 : f32 to vector<8x128xf32>
    %55 = arith.mulf %54, %46 : vector<8x128xf32>
    %cst_34 = arith.constant 5.000000e-02 : f32
    %56 = vector.broadcast %cst_34 : f32 to vector<8x128xf32>
    %57 = arith.mulf %56, %42 : vector<8x128xf32>
    %58 = arith.addf %55, %57 : vector<8x128xf32>
    %cst_35 = arith.constant 8.000000e-01 : f32
    %59 = vector.broadcast %cst_35 : f32 to vector<8x128xf32>
    %60 = arith.mulf %59, %42 : vector<8x128xf32>
    %61 = arith.addf %60, %53 : vector<8x128xf32>
    %cst_36 = arith.constant 1.000000e+00 : f32
    %62 = vector.broadcast %cst_36 : f32 to vector<8x128xf32>
    %63 = arith.cmpf ogt, %58, %62 : vector<8x128xf32>
    %cst_37 = arith.constant 0.000000e+00 : f32
    %64 = vector.broadcast %cst_37 : f32 to vector<8x128xf32>
    %65 = arith.select %63, %64, %58 : vector<8x128xi1>, vector<8x128xf32>
    %c2_i32 = arith.constant 2 : i32
    %66 = arith.addi %14, %c2_i32 : i32
    %c1_i32_38 = arith.constant 1 : i32
    %67 = arith.addi %66, %c1_i32_38 : i32
    %68 = arith.sitofp %67 : i32 to f32
    %69 = vector.broadcast %68 : f32 to vector<8x128xf32>
    %70 = arith.minimumf %52, %69 : vector<8x128xf32>
    %71 = arith.select %63, %70, %52 : vector<8x128xi1>, vector<8x128xf32>
    %c24 = arith.constant 24 : index
    %c0_39 = arith.constant 0 : index
    %72 = vector.load %arg8[%c24, %c0_39] : memref<152x128xf32, #tpu.memory_space<vmem>>, vector<8x128xf32>
    %cst_40 = arith.constant 0.949999988 : f32
    %73 = vector.broadcast %cst_40 : f32 to vector<8x128xf32>
    %74 = arith.mulf %73, %65 : vector<8x128xf32>
    %cst_41 = arith.constant 5.000000e-02 : f32
    %75 = vector.broadcast %cst_41 : f32 to vector<8x128xf32>
    %76 = arith.mulf %75, %61 : vector<8x128xf32>
    %77 = arith.addf %74, %76 : vector<8x128xf32>
    %cst_42 = arith.constant 8.000000e-01 : f32
    %78 = vector.broadcast %cst_42 : f32 to vector<8x128xf32>
    %79 = arith.mulf %78, %61 : vector<8x128xf32>
    %80 = arith.addf %79, %72 : vector<8x128xf32>
    %cst_43 = arith.constant 1.000000e+00 : f32
    %81 = vector.broadcast %cst_43 : f32 to vector<8x128xf32>
    %82 = arith.cmpf ogt, %77, %81 : vector<8x128xf32>
    %cst_44 = arith.constant 0.000000e+00 : f32
    %83 = vector.broadcast %cst_44 : f32 to vector<8x128xf32>
    %84 = arith.select %82, %83, %77 : vector<8x128xi1>, vector<8x128xf32>
    %c3_i32 = arith.constant 3 : i32
    %85 = arith.addi %14, %c3_i32 : i32
    %c1_i32_45 = arith.constant 1 : i32
    %86 = arith.addi %85, %c1_i32_45 : i32
    %87 = arith.sitofp %86 : i32 to f32
    %88 = vector.broadcast %87 : f32 to vector<8x128xf32>
    %89 = arith.minimumf %71, %88 : vector<8x128xf32>
    %90 = arith.select %82, %89, %71 : vector<8x128xi1>, vector<8x128xf32>
    %c32 = arith.constant 32 : index
    %c0_46 = arith.constant 0 : index
    %91 = vector.load %arg8[%c32, %c0_46] : memref<152x128xf32, #tpu.memory_space<vmem>>, vector<8x128xf32>
    %cst_47 = arith.constant 0.949999988 : f32
    %92 = vector.broadcast %cst_47 : f32 to vector<8x128xf32>
    %93 = arith.mulf %92, %84 : vector<8x128xf32>
    %cst_48 = arith.constant 5.000000e-02 : f32
    %94 = vector.broadcast %cst_48 : f32 to vector<8x128xf32>
    %95 = arith.mulf %94, %80 : vector<8x128xf32>
    %96 = arith.addf %93, %95 : vector<8x128xf32>
    %cst_49 = arith.constant 8.000000e-01 : f32
    %97 = vector.broadcast %cst_49 : f32 to vector<8x128xf32>
    %98 = arith.mulf %97, %80 : vector<8x128xf32>
    %99 = arith.addf %98, %91 : vector<8x128xf32>
    %cst_50 = arith.constant 1.000000e+00 : f32
    %100 = vector.broadcast %cst_50 : f32 to vector<8x128xf32>
    %101 = arith.cmpf ogt, %96, %100 : vector<8x128xf32>
    %cst_51 = arith.constant 0.000000e+00 : f32
    %102 = vector.broadcast %cst_51 : f32 to vector<8x128xf32>
    %103 = arith.select %101, %102, %96 : vector<8x128xi1>, vector<8x128xf32>
    %c4_i32 = arith.constant 4 : i32
    %104 = arith.addi %14, %c4_i32 : i32
    %c1_i32_52 = arith.constant 1 : i32
    %105 = arith.addi %104, %c1_i32_52 : i32
    %106 = arith.sitofp %105 : i32 to f32
    %107 = vector.broadcast %106 : f32 to vector<8x128xf32>
    %108 = arith.minimumf %90, %107 : vector<8x128xf32>
    %109 = arith.select %101, %108, %90 : vector<8x128xi1>, vector<8x128xf32>
    %c40 = arith.constant 40 : index
    %c0_53 = arith.constant 0 : index
    %110 = vector.load %arg8[%c40, %c0_53] : memref<152x128xf32, #tpu.memory_space<vmem>>, vector<8x128xf32>
    %cst_54 = arith.constant 0.949999988 : f32
    %111 = vector.broadcast %cst_54 : f32 to vector<8x128xf32>
    %112 = arith.mulf %111, %103 : vector<8x128xf32>
    %cst_55 = arith.constant 5.000000e-02 : f32
    %113 = vector.broadcast %cst_55 : f32 to vector<8x128xf32>
    %114 = arith.mulf %113, %99 : vector<8x128xf32>
    %115 = arith.addf %112, %114 : vector<8x128xf32>
    %cst_56 = arith.constant 8.000000e-01 : f32
    %116 = vector.broadcast %cst_56 : f32 to vector<8x128xf32>
    %117 = arith.mulf %116, %99 : vector<8x128xf32>
    %118 = arith.addf %117, %110 : vector<8x128xf32>
    %cst_57 = arith.constant 1.000000e+00 : f32
    %119 = vector.broadcast %cst_57 : f32 to vector<8x128xf32>
    %120 = arith.cmpf ogt, %115, %119 : vector<8x128xf32>
    %cst_58 = arith.constant 0.000000e+00 : f32
    %121 = vector.broadcast %cst_58 : f32 to vector<8x128xf32>
    %122 = arith.select %120, %121, %115 : vector<8x128xi1>, vector<8x128xf32>
    %c5_i32 = arith.constant 5 : i32
    %123 = arith.addi %14, %c5_i32 : i32
    %c1_i32_59 = arith.constant 1 : i32
    %124 = arith.addi %123, %c1_i32_59 : i32
    %125 = arith.sitofp %124 : i32 to f32
    %126 = vector.broadcast %125 : f32 to vector<8x128xf32>
    %127 = arith.minimumf %109, %126 : vector<8x128xf32>
    %128 = arith.select %120, %127, %109 : vector<8x128xi1>, vector<8x128xf32>
    %c48 = arith.constant 48 : index
    %c0_60 = arith.constant 0 : index
    %129 = vector.load %arg8[%c48, %c0_60] : memref<152x128xf32, #tpu.memory_space<vmem>>, vector<8x128xf32>
    %cst_61 = arith.constant 0.949999988 : f32
    %130 = vector.broadcast %cst_61 : f32 to vector<8x128xf32>
    %131 = arith.mulf %130, %122 : vector<8x128xf32>
    %cst_62 = arith.constant 5.000000e-02 : f32
    %132 = vector.broadcast %cst_62 : f32 to vector<8x128xf32>
    %133 = arith.mulf %132, %118 : vector<8x128xf32>
    %134 = arith.addf %131, %133 : vector<8x128xf32>
    %cst_63 = arith.constant 8.000000e-01 : f32
    %135 = vector.broadcast %cst_63 : f32 to vector<8x128xf32>
    %136 = arith.mulf %135, %118 : vector<8x128xf32>
    %137 = arith.addf %136, %129 : vector<8x128xf32>
    %cst_64 = arith.constant 1.000000e+00 : f32
    %138 = vector.broadcast %cst_64 : f32 to vector<8x128xf32>
    %139 = arith.cmpf ogt, %134, %138 : vector<8x128xf32>
    %cst_65 = arith.constant 0.000000e+00 : f32
    %140 = vector.broadcast %cst_65 : f32 to vector<8x128xf32>
    %141 = arith.select %139, %140, %134 : vector<8x128xi1>, vector<8x128xf32>
    %c6_i32 = arith.constant 6 : i32
    %142 = arith.addi %14, %c6_i32 : i32
    %c1_i32_66 = arith.constant 1 : i32
    %143 = arith.addi %142, %c1_i32_66 : i32
    %144 = arith.sitofp %143 : i32 to f32
    %145 = vector.broadcast %144 : f32 to vector<8x128xf32>
    %146 = arith.minimumf %128, %145 : vector<8x128xf32>
    %147 = arith.select %139, %146, %128 : vector<8x128xi1>, vector<8x128xf32>
    %c56 = arith.constant 56 : index
    %c0_67 = arith.constant 0 : index
    %148 = vector.load %arg8[%c56, %c0_67] : memref<152x128xf32, #tpu.memory_space<vmem>>, vector<8x128xf32>
    %cst_68 = arith.constant 0.949999988 : f32
    %149 = vector.broadcast %cst_68 : f32 to vector<8x128xf32>
    %150 = arith.mulf %149, %141 : vector<8x128xf32>
    %cst_69 = arith.constant 5.000000e-02 : f32
    %151 = vector.broadcast %cst_69 : f32 to vector<8x128xf32>
    %152 = arith.mulf %151, %137 : vector<8x128xf32>
    %153 = arith.addf %150, %152 : vector<8x128xf32>
    %cst_70 = arith.constant 8.000000e-01 : f32
    %154 = vector.broadcast %cst_70 : f32 to vector<8x128xf32>
    %155 = arith.mulf %154, %137 : vector<8x128xf32>
    %156 = arith.addf %155, %148 : vector<8x128xf32>
    %cst_71 = arith.constant 1.000000e+00 : f32
    %157 = vector.broadcast %cst_71 : f32 to vector<8x128xf32>
    %158 = arith.cmpf ogt, %153, %157 : vector<8x128xf32>
    %cst_72 = arith.constant 0.000000e+00 : f32
    %159 = vector.broadcast %cst_72 : f32 to vector<8x128xf32>
    %160 = arith.select %158, %159, %153 : vector<8x128xi1>, vector<8x128xf32>
    %c7_i32 = arith.constant 7 : i32
    %161 = arith.addi %14, %c7_i32 : i32
    %c1_i32_73 = arith.constant 1 : i32
    %162 = arith.addi %161, %c1_i32_73 : i32
    %163 = arith.sitofp %162 : i32 to f32
    %164 = vector.broadcast %163 : f32 to vector<8x128xf32>
    %165 = arith.minimumf %147, %164 : vector<8x128xf32>
    %166 = arith.select %158, %165, %147 : vector<8x128xi1>, vector<8x128xf32>
    %c64 = arith.constant 64 : index
    %c0_74 = arith.constant 0 : index
    %167 = vector.load %arg8[%c64, %c0_74] : memref<152x128xf32, #tpu.memory_space<vmem>>, vector<8x128xf32>
    %cst_75 = arith.constant 0.949999988 : f32
    %168 = vector.broadcast %cst_75 : f32 to vector<8x128xf32>
    %169 = arith.mulf %168, %160 : vector<8x128xf32>
    %cst_76 = arith.constant 5.000000e-02 : f32
    %170 = vector.broadcast %cst_76 : f32 to vector<8x128xf32>
    %171 = arith.mulf %170, %156 : vector<8x128xf32>
    %172 = arith.addf %169, %171 : vector<8x128xf32>
    %cst_77 = arith.constant 8.000000e-01 : f32
    %173 = vector.broadcast %cst_77 : f32 to vector<8x128xf32>
    %174 = arith.mulf %173, %156 : vector<8x128xf32>
    %175 = arith.addf %174, %167 : vector<8x128xf32>
    %cst_78 = arith.constant 1.000000e+00 : f32
    %176 = vector.broadcast %cst_78 : f32 to vector<8x128xf32>
    %177 = arith.cmpf ogt, %172, %176 : vector<8x128xf32>
    %cst_79 = arith.constant 0.000000e+00 : f32
    %178 = vector.broadcast %cst_79 : f32 to vector<8x128xf32>
    %179 = arith.select %177, %178, %172 : vector<8x128xi1>, vector<8x128xf32>
    %c8_i32 = arith.constant 8 : i32
    %180 = arith.addi %14, %c8_i32 : i32
    %c1_i32_80 = arith.constant 1 : i32
    %181 = arith.addi %180, %c1_i32_80 : i32
    %182 = arith.sitofp %181 : i32 to f32
    %183 = vector.broadcast %182 : f32 to vector<8x128xf32>
    %184 = arith.minimumf %166, %183 : vector<8x128xf32>
    %185 = arith.select %177, %184, %166 : vector<8x128xi1>, vector<8x128xf32>
    %c72 = arith.constant 72 : index
    %c0_81 = arith.constant 0 : index
    %186 = vector.load %arg8[%c72, %c0_81] : memref<152x128xf32, #tpu.memory_space<vmem>>, vector<8x128xf32>
    %cst_82 = arith.constant 0.949999988 : f32
    %187 = vector.broadcast %cst_82 : f32 to vector<8x128xf32>
    %188 = arith.mulf %187, %179 : vector<8x128xf32>
    %cst_83 = arith.constant 5.000000e-02 : f32
    %189 = vector.broadcast %cst_83 : f32 to vector<8x128xf32>
    %190 = arith.mulf %189, %175 : vector<8x128xf32>
    %191 = arith.addf %188, %190 : vector<8x128xf32>
    %cst_84 = arith.constant 8.000000e-01 : f32
    %192 = vector.broadcast %cst_84 : f32 to vector<8x128xf32>
    %193 = arith.mulf %192, %175 : vector<8x128xf32>
    %194 = arith.addf %193, %186 : vector<8x128xf32>
    %cst_85 = arith.constant 1.000000e+00 : f32
    %195 = vector.broadcast %cst_85 : f32 to vector<8x128xf32>
    %196 = arith.cmpf ogt, %191, %195 : vector<8x128xf32>
    %cst_86 = arith.constant 0.000000e+00 : f32
    %197 = vector.broadcast %cst_86 : f32 to vector<8x128xf32>
    %198 = arith.select %196, %197, %191 : vector<8x128xi1>, vector<8x128xf32>
    %c9_i32 = arith.constant 9 : i32
    %199 = arith.addi %14, %c9_i32 : i32
    %c1_i32_87 = arith.constant 1 : i32
    %200 = arith.addi %199, %c1_i32_87 : i32
    %201 = arith.sitofp %200 : i32 to f32
    %202 = vector.broadcast %201 : f32 to vector<8x128xf32>
    %203 = arith.minimumf %185, %202 : vector<8x128xf32>
    %204 = arith.select %196, %203, %185 : vector<8x128xi1>, vector<8x128xf32>
    %c80 = arith.constant 80 : index
    %c0_88 = arith.constant 0 : index
    %205 = vector.load %arg8[%c80, %c0_88] : memref<152x128xf32, #tpu.memory_space<vmem>>, vector<8x128xf32>
    %cst_89 = arith.constant 0.949999988 : f32
    %206 = vector.broadcast %cst_89 : f32 to vector<8x128xf32>
    %207 = arith.mulf %206, %198 : vector<8x128xf32>
    %cst_90 = arith.constant 5.000000e-02 : f32
    %208 = vector.broadcast %cst_90 : f32 to vector<8x128xf32>
    %209 = arith.mulf %208, %194 : vector<8x128xf32>
    %210 = arith.addf %207, %209 : vector<8x128xf32>
    %cst_91 = arith.constant 8.000000e-01 : f32
    %211 = vector.broadcast %cst_91 : f32 to vector<8x128xf32>
    %212 = arith.mulf %211, %194 : vector<8x128xf32>
    %213 = arith.addf %212, %205 : vector<8x128xf32>
    %cst_92 = arith.constant 1.000000e+00 : f32
    %214 = vector.broadcast %cst_92 : f32 to vector<8x128xf32>
    %215 = arith.cmpf ogt, %210, %214 : vector<8x128xf32>
    %cst_93 = arith.constant 0.000000e+00 : f32
    %216 = vector.broadcast %cst_93 : f32 to vector<8x128xf32>
    %217 = arith.select %215, %216, %210 : vector<8x128xi1>, vector<8x128xf32>
    %c10_i32 = arith.constant 10 : i32
    %218 = arith.addi %14, %c10_i32 : i32
    %c1_i32_94 = arith.constant 1 : i32
    %219 = arith.addi %218, %c1_i32_94 : i32
    %220 = arith.sitofp %219 : i32 to f32
    %221 = vector.broadcast %220 : f32 to vector<8x128xf32>
    %222 = arith.minimumf %204, %221 : vector<8x128xf32>
    %223 = arith.select %215, %222, %204 : vector<8x128xi1>, vector<8x128xf32>
    %c88 = arith.constant 88 : index
    %c0_95 = arith.constant 0 : index
    %224 = vector.load %arg8[%c88, %c0_95] : memref<152x128xf32, #tpu.memory_space<vmem>>, vector<8x128xf32>
    %cst_96 = arith.constant 0.949999988 : f32
    %225 = vector.broadcast %cst_96 : f32 to vector<8x128xf32>
    %226 = arith.mulf %225, %217 : vector<8x128xf32>
    %cst_97 = arith.constant 5.000000e-02 : f32
    %227 = vector.broadcast %cst_97 : f32 to vector<8x128xf32>
    %228 = arith.mulf %227, %213 : vector<8x128xf32>
    %229 = arith.addf %226, %228 : vector<8x128xf32>
    %cst_98 = arith.constant 8.000000e-01 : f32
    %230 = vector.broadcast %cst_98 : f32 to vector<8x128xf32>
    %231 = arith.mulf %230, %213 : vector<8x128xf32>
    %232 = arith.addf %231, %224 : vector<8x128xf32>
    %cst_99 = arith.constant 1.000000e+00 : f32
    %233 = vector.broadcast %cst_99 : f32 to vector<8x128xf32>
    %234 = arith.cmpf ogt, %229, %233 : vector<8x128xf32>
    %cst_100 = arith.constant 0.000000e+00 : f32
    %235 = vector.broadcast %cst_100 : f32 to vector<8x128xf32>
    %236 = arith.select %234, %235, %229 : vector<8x128xi1>, vector<8x128xf32>
    %c11_i32 = arith.constant 11 : i32
    %237 = arith.addi %14, %c11_i32 : i32
    %c1_i32_101 = arith.constant 1 : i32
    %238 = arith.addi %237, %c1_i32_101 : i32
    %239 = arith.sitofp %238 : i32 to f32
    %240 = vector.broadcast %239 : f32 to vector<8x128xf32>
    %241 = arith.minimumf %223, %240 : vector<8x128xf32>
    %242 = arith.select %234, %241, %223 : vector<8x128xi1>, vector<8x128xf32>
    %c96 = arith.constant 96 : index
    %c0_102 = arith.constant 0 : index
    %243 = vector.load %arg8[%c96, %c0_102] : memref<152x128xf32, #tpu.memory_space<vmem>>, vector<8x128xf32>
    %cst_103 = arith.constant 0.949999988 : f32
    %244 = vector.broadcast %cst_103 : f32 to vector<8x128xf32>
    %245 = arith.mulf %244, %236 : vector<8x128xf32>
    %cst_104 = arith.constant 5.000000e-02 : f32
    %246 = vector.broadcast %cst_104 : f32 to vector<8x128xf32>
    %247 = arith.mulf %246, %232 : vector<8x128xf32>
    %248 = arith.addf %245, %247 : vector<8x128xf32>
    %cst_105 = arith.constant 8.000000e-01 : f32
    %249 = vector.broadcast %cst_105 : f32 to vector<8x128xf32>
    %250 = arith.mulf %249, %232 : vector<8x128xf32>
    %251 = arith.addf %250, %243 : vector<8x128xf32>
    %cst_106 = arith.constant 1.000000e+00 : f32
    %252 = vector.broadcast %cst_106 : f32 to vector<8x128xf32>
    %253 = arith.cmpf ogt, %248, %252 : vector<8x128xf32>
    %cst_107 = arith.constant 0.000000e+00 : f32
    %254 = vector.broadcast %cst_107 : f32 to vector<8x128xf32>
    %255 = arith.select %253, %254, %248 : vector<8x128xi1>, vector<8x128xf32>
    %c12_i32 = arith.constant 12 : i32
    %256 = arith.addi %14, %c12_i32 : i32
    %c1_i32_108 = arith.constant 1 : i32
    %257 = arith.addi %256, %c1_i32_108 : i32
    %258 = arith.sitofp %257 : i32 to f32
    %259 = vector.broadcast %258 : f32 to vector<8x128xf32>
    %260 = arith.minimumf %242, %259 : vector<8x128xf32>
    %261 = arith.select %253, %260, %242 : vector<8x128xi1>, vector<8x128xf32>
    %c104 = arith.constant 104 : index
    %c0_109 = arith.constant 0 : index
    %262 = vector.load %arg8[%c104, %c0_109] : memref<152x128xf32, #tpu.memory_space<vmem>>, vector<8x128xf32>
    %cst_110 = arith.constant 0.949999988 : f32
    %263 = vector.broadcast %cst_110 : f32 to vector<8x128xf32>
    %264 = arith.mulf %263, %255 : vector<8x128xf32>
    %cst_111 = arith.constant 5.000000e-02 : f32
    %265 = vector.broadcast %cst_111 : f32 to vector<8x128xf32>
    %266 = arith.mulf %265, %251 : vector<8x128xf32>
    %267 = arith.addf %264, %266 : vector<8x128xf32>
    %cst_112 = arith.constant 8.000000e-01 : f32
    %268 = vector.broadcast %cst_112 : f32 to vector<8x128xf32>
    %269 = arith.mulf %268, %251 : vector<8x128xf32>
    %270 = arith.addf %269, %262 : vector<8x128xf32>
    %cst_113 = arith.constant 1.000000e+00 : f32
    %271 = vector.broadcast %cst_113 : f32 to vector<8x128xf32>
    %272 = arith.cmpf ogt, %267, %271 : vector<8x128xf32>
    %cst_114 = arith.constant 0.000000e+00 : f32
    %273 = vector.broadcast %cst_114 : f32 to vector<8x128xf32>
    %274 = arith.select %272, %273, %267 : vector<8x128xi1>, vector<8x128xf32>
    %c13_i32 = arith.constant 13 : i32
    %275 = arith.addi %14, %c13_i32 : i32
    %c1_i32_115 = arith.constant 1 : i32
    %276 = arith.addi %275, %c1_i32_115 : i32
    %277 = arith.sitofp %276 : i32 to f32
    %278 = vector.broadcast %277 : f32 to vector<8x128xf32>
    %279 = arith.minimumf %261, %278 : vector<8x128xf32>
    %280 = arith.select %272, %279, %261 : vector<8x128xi1>, vector<8x128xf32>
    %c112 = arith.constant 112 : index
    %c0_116 = arith.constant 0 : index
    %281 = vector.load %arg8[%c112, %c0_116] : memref<152x128xf32, #tpu.memory_space<vmem>>, vector<8x128xf32>
    %cst_117 = arith.constant 0.949999988 : f32
    %282 = vector.broadcast %cst_117 : f32 to vector<8x128xf32>
    %283 = arith.mulf %282, %274 : vector<8x128xf32>
    %cst_118 = arith.constant 5.000000e-02 : f32
    %284 = vector.broadcast %cst_118 : f32 to vector<8x128xf32>
    %285 = arith.mulf %284, %270 : vector<8x128xf32>
    %286 = arith.addf %283, %285 : vector<8x128xf32>
    %cst_119 = arith.constant 8.000000e-01 : f32
    %287 = vector.broadcast %cst_119 : f32 to vector<8x128xf32>
    %288 = arith.mulf %287, %270 : vector<8x128xf32>
    %289 = arith.addf %288, %281 : vector<8x128xf32>
    %cst_120 = arith.constant 1.000000e+00 : f32
    %290 = vector.broadcast %cst_120 : f32 to vector<8x128xf32>
    %291 = arith.cmpf ogt, %286, %290 : vector<8x128xf32>
    %cst_121 = arith.constant 0.000000e+00 : f32
    %292 = vector.broadcast %cst_121 : f32 to vector<8x128xf32>
    %293 = arith.select %291, %292, %286 : vector<8x128xi1>, vector<8x128xf32>
    %c14_i32 = arith.constant 14 : i32
    %294 = arith.addi %14, %c14_i32 : i32
    %c1_i32_122 = arith.constant 1 : i32
    %295 = arith.addi %294, %c1_i32_122 : i32
    %296 = arith.sitofp %295 : i32 to f32
    %297 = vector.broadcast %296 : f32 to vector<8x128xf32>
    %298 = arith.minimumf %280, %297 : vector<8x128xf32>
    %299 = arith.select %291, %298, %280 : vector<8x128xi1>, vector<8x128xf32>
    %c120 = arith.constant 120 : index
    %c0_123 = arith.constant 0 : index
    %300 = vector.load %arg8[%c120, %c0_123] : memref<152x128xf32, #tpu.memory_space<vmem>>, vector<8x128xf32>
    %cst_124 = arith.constant 0.949999988 : f32
    %301 = vector.broadcast %cst_124 : f32 to vector<8x128xf32>
    %302 = arith.mulf %301, %293 : vector<8x128xf32>
    %cst_125 = arith.constant 5.000000e-02 : f32
    %303 = vector.broadcast %cst_125 : f32 to vector<8x128xf32>
    %304 = arith.mulf %303, %289 : vector<8x128xf32>
    %305 = arith.addf %302, %304 : vector<8x128xf32>
    %cst_126 = arith.constant 8.000000e-01 : f32
    %306 = vector.broadcast %cst_126 : f32 to vector<8x128xf32>
    %307 = arith.mulf %306, %289 : vector<8x128xf32>
    %308 = arith.addf %307, %300 : vector<8x128xf32>
    %cst_127 = arith.constant 1.000000e+00 : f32
    %309 = vector.broadcast %cst_127 : f32 to vector<8x128xf32>
    %310 = arith.cmpf ogt, %305, %309 : vector<8x128xf32>
    %cst_128 = arith.constant 0.000000e+00 : f32
    %311 = vector.broadcast %cst_128 : f32 to vector<8x128xf32>
    %312 = arith.select %310, %311, %305 : vector<8x128xi1>, vector<8x128xf32>
    %c15_i32 = arith.constant 15 : i32
    %313 = arith.addi %14, %c15_i32 : i32
    %c1_i32_129 = arith.constant 1 : i32
    %314 = arith.addi %313, %c1_i32_129 : i32
    %315 = arith.sitofp %314 : i32 to f32
    %316 = vector.broadcast %315 : f32 to vector<8x128xf32>
    %317 = arith.minimumf %299, %316 : vector<8x128xf32>
    %318 = arith.select %310, %317, %299 : vector<8x128xi1>, vector<8x128xf32>
    %c128 = arith.constant 128 : index
    %c0_130 = arith.constant 0 : index
    %319 = vector.load %arg8[%c128, %c0_130] : memref<152x128xf32, #tpu.memory_space<vmem>>, vector<8x128xf32>
    %cst_131 = arith.constant 0.949999988 : f32
    %320 = vector.broadcast %cst_131 : f32 to vector<8x128xf32>
    %321 = arith.mulf %320, %312 : vector<8x128xf32>
    %cst_132 = arith.constant 5.000000e-02 : f32
    %322 = vector.broadcast %cst_132 : f32 to vector<8x128xf32>
    %323 = arith.mulf %322, %308 : vector<8x128xf32>
    %324 = arith.addf %321, %323 : vector<8x128xf32>
    %cst_133 = arith.constant 8.000000e-01 : f32
    %325 = vector.broadcast %cst_133 : f32 to vector<8x128xf32>
    %326 = arith.mulf %325, %308 : vector<8x128xf32>
    %327 = arith.addf %326, %319 : vector<8x128xf32>
    %cst_134 = arith.constant 1.000000e+00 : f32
    %328 = vector.broadcast %cst_134 : f32 to vector<8x128xf32>
    %329 = arith.cmpf ogt, %324, %328 : vector<8x128xf32>
    %cst_135 = arith.constant 0.000000e+00 : f32
    %330 = vector.broadcast %cst_135 : f32 to vector<8x128xf32>
    %331 = arith.select %329, %330, %324 : vector<8x128xi1>, vector<8x128xf32>
    %c16_i32 = arith.constant 16 : i32
    %332 = arith.addi %14, %c16_i32 : i32
    %c1_i32_136 = arith.constant 1 : i32
    %333 = arith.addi %332, %c1_i32_136 : i32
    %334 = arith.sitofp %333 : i32 to f32
    %335 = vector.broadcast %334 : f32 to vector<8x128xf32>
    %336 = arith.minimumf %318, %335 : vector<8x128xf32>
    %337 = arith.select %329, %336, %318 : vector<8x128xi1>, vector<8x128xf32>
    %c136 = arith.constant 136 : index
    %c0_137 = arith.constant 0 : index
    %338 = vector.load %arg8[%c136, %c0_137] : memref<152x128xf32, #tpu.memory_space<vmem>>, vector<8x128xf32>
    %cst_138 = arith.constant 0.949999988 : f32
    %339 = vector.broadcast %cst_138 : f32 to vector<8x128xf32>
    %340 = arith.mulf %339, %331 : vector<8x128xf32>
    %cst_139 = arith.constant 5.000000e-02 : f32
    %341 = vector.broadcast %cst_139 : f32 to vector<8x128xf32>
    %342 = arith.mulf %341, %327 : vector<8x128xf32>
    %343 = arith.addf %340, %342 : vector<8x128xf32>
    %cst_140 = arith.constant 8.000000e-01 : f32
    %344 = vector.broadcast %cst_140 : f32 to vector<8x128xf32>
    %345 = arith.mulf %344, %327 : vector<8x128xf32>
    %346 = arith.addf %345, %338 : vector<8x128xf32>
    %cst_141 = arith.constant 1.000000e+00 : f32
    %347 = vector.broadcast %cst_141 : f32 to vector<8x128xf32>
    %348 = arith.cmpf ogt, %343, %347 : vector<8x128xf32>
    %cst_142 = arith.constant 0.000000e+00 : f32
    %349 = vector.broadcast %cst_142 : f32 to vector<8x128xf32>
    %350 = arith.select %348, %349, %343 : vector<8x128xi1>, vector<8x128xf32>
    %c17_i32 = arith.constant 17 : i32
    %351 = arith.addi %14, %c17_i32 : i32
    %c1_i32_143 = arith.constant 1 : i32
    %352 = arith.addi %351, %c1_i32_143 : i32
    %353 = arith.sitofp %352 : i32 to f32
    %354 = vector.broadcast %353 : f32 to vector<8x128xf32>
    %355 = arith.minimumf %337, %354 : vector<8x128xf32>
    %356 = arith.select %348, %355, %337 : vector<8x128xi1>, vector<8x128xf32>
    %c144 = arith.constant 144 : index
    %c0_144 = arith.constant 0 : index
    %357 = vector.load %arg8[%c144, %c0_144] : memref<152x128xf32, #tpu.memory_space<vmem>>, vector<8x128xf32>
    %cst_145 = arith.constant 0.949999988 : f32
    %358 = vector.broadcast %cst_145 : f32 to vector<8x128xf32>
    %359 = arith.mulf %358, %350 : vector<8x128xf32>
    %cst_146 = arith.constant 5.000000e-02 : f32
    %360 = vector.broadcast %cst_146 : f32 to vector<8x128xf32>
    %361 = arith.mulf %360, %346 : vector<8x128xf32>
    %362 = arith.addf %359, %361 : vector<8x128xf32>
    %cst_147 = arith.constant 8.000000e-01 : f32
    %363 = vector.broadcast %cst_147 : f32 to vector<8x128xf32>
    %364 = arith.mulf %363, %346 : vector<8x128xf32>
    %365 = arith.addf %364, %357 : vector<8x128xf32>
    %cst_148 = arith.constant 1.000000e+00 : f32
    %366 = vector.broadcast %cst_148 : f32 to vector<8x128xf32>
    %367 = arith.cmpf ogt, %362, %366 : vector<8x128xf32>
    %cst_149 = arith.constant 0.000000e+00 : f32
    %368 = vector.broadcast %cst_149 : f32 to vector<8x128xf32>
    %369 = arith.select %367, %368, %362 : vector<8x128xi1>, vector<8x128xf32>
    %c18_i32 = arith.constant 18 : i32
    %370 = arith.addi %14, %c18_i32 : i32
    %c1_i32_150 = arith.constant 1 : i32
    %371 = arith.addi %370, %c1_i32_150 : i32
    %372 = arith.sitofp %371 : i32 to f32
    %373 = vector.broadcast %372 : f32 to vector<8x128xf32>
    %374 = arith.minimumf %356, %373 : vector<8x128xf32>
    %375 = arith.select %367, %374, %356 : vector<8x128xi1>, vector<8x128xf32>
    %c0_151 = arith.constant 0 : index
    %c0_152 = arith.constant 0 : index
    %376 = vector.load %arg6[%c0_151, %c0_152] : memref<8x128xf32, #tpu.memory_space<vmem>>, vector<8x128xf32>
    tpu.vector_store %arg6[%c0_151, %c0_152], %369 {strides = array<i32>} : memref<8x128xf32, #tpu.memory_space<vmem>>, vector<8x128xf32>,
    %c0_153 = arith.constant 0 : index
    %c0_154 = arith.constant 0 : index
    %377 = vector.load %arg7[%c0_153, %c0_154] : memref<8x128xf32, #tpu.memory_space<vmem>>, vector<8x128xf32>
    tpu.vector_store %arg7[%c0_153, %c0_154], %365 {strides = array<i32>} : memref<8x128xf32, #tpu.memory_space<vmem>>, vector<8x128xf32>,
    %c0_155 = arith.constant 0 : index
    %c0_156 = arith.constant 0 : index
    %378 = vector.load %arg5[%c0_155, %c0_156] : memref<8x128xf32, #tpu.memory_space<vmem>>, vector<8x128xf32>
    tpu.vector_store %arg5[%c0_155, %c0_156], %375 {strides = array<i32>} : memref<8x128xf32, #tpu.memory_space<vmem>>, vector<8x128xf32>,
    return
  }
  func.func @transform_0(%arg0: i32, %arg1: i32) -> (i32, i32, i32) {
    %c0_i32 = arith.constant 0 : i32
    %c0_i32_0 = arith.constant 0 : i32
    return %arg1, %arg0, %c0_i32 : i32, i32, i32
  }
  func.func @transform_1(%arg0: i32, %arg1: i32) -> (i32, i32) {
    %c0_i32 = arith.constant 0 : i32
    %c0_i32_0 = arith.constant 0 : i32
    %c0_i32_1 = arith.constant 0 : i32
    return %c0_i32, %c0_i32_0 : i32, i32
  }
  func.func @transform_2(%arg0: i32, %arg1: i32) -> (i32, i32) {
    %c0_i32 = arith.constant 0 : i32
    %c0_i32_0 = arith.constant 0 : i32
    %c0_i32_1 = arith.constant 0 : i32
    return %c0_i32, %c0_i32_0 : i32, i32
  }
  func.func @transform_3(%arg0: i32, %arg1: i32) -> (i32, i32) {
    %c0_i32 = arith.constant 0 : i32
    %c0_i32_0 = arith.constant 0 : i32
    return %arg0, %c0_i32 : i32, i32
  }
}

</mosaic_0001>

<bundles_post_ra>
// kernel: tpu_custom_call.1
= control target key start
LH: loop header
LB: loop body
LE: loop exit
PB: predicated region body
PF: predicated region fallthrough
CT: control target
= control target key end

     0   :  { %8 = vsyncpa [#allocation6], 0  ;;  %s1067_s0 = inlined_call_operand.hbm [shape: bf16[19,8,32], index: 0, kind: input, shape index: {}]   ;;  %s1068_s1 = inlined_call_operand.hbm [shape: bf16[32,128], index: 1, kind: input, shape index: {}]   ;;  %s1069_s2 = inlined_call_operand.hbm [shape: bf16[32,128], index: 2, kind: input, shape index: {}]   ;;  %s1070_s3 = inlined_call_operand.hbm [shape: f32[8,128], index: 3, kind: output, shape index: {}]  }
   0x1   :  { %9 = vsyncpa [#allocation9], 0 }
   0x2   :  { %10 = vsyncpa [#allocation7], 0  ;;  %s944_s12 = smov [#allocation8]   ;;  %s945_s14 = smov [#allocation5]  }
   0x3   :  { %s28_s13 = sshll.u32 %s944_s12, 4  ;;  %s16_s15 = sshll.u32 %s945_s14, 4  ;;  %s29_s13 = int_to_ptr.vmem [resolvable:$true] %s28_s13  ;;  %s971_s15 = int_to_ptr.vmem [resolvable:$true] %s16_s15 }
   0x4   :  { %s850_s18 = scalar_lea.hbm %s1068_s1, 256 }
   0x5   :  { %p851_p0 = scmp.ne.s32.totalorder %s1068_s1, %s850_s18  ;;  %p854_p1 = scmp.lt.u32.totalorder %s850_s18, %s1068_s1 }
   0x7   :  { %p856_p2 = pnand %p854_p1, %p851_p0 }
   0x9   :  { %859 = shalt.err (!%p856_p2)
}
   0xa   :  { %s860_s23 = scalar_lea.vmem %s29_s13, 256  ;;  %p865_p4 = scmp.lt.s32.totalorder %s29_s13, %s29_s13 }
   0xb   :  { %p861_p3 = scmp.ne.s32.totalorder %s29_s13, %s860_s23  ;;  %p866_p5 = scmp.lt.s32.totalorder %s860_s23, %s860_s23 }
   0xd   :  { %p867_p6 = por %p866_p5, %p865_p4 }
   0xf   :  { %p868_p7 = pnand %p867_p6, %p861_p3 }
  0x11   :  { %871 = shalt.err (!%p868_p7)
}
  0x12   :  { %s946_s24 = smov 64   ;;  %s947_s25 = smov 4  }
  0x13   :  { %34 = dma.hbm_to_vmem [thread:$0]  %s1068_s1, 256, %s29_s13, [#allocation9], %s946_s24, %s946_s24, %s947_s25  }
  0x14   :  { %s872_s30 = scalar_lea.hbm %s1067_s0, 1216 }
  0x15   :  { %p873_p8 = scmp.ne.s32.totalorder %s1067_s0, %s872_s30  ;;  %p876_p9 = scmp.lt.u32.totalorder %s872_s30, %s1067_s0 }
  0x17   :  { %p878_p10 = pnand %p876_p9, %p873_p8 }
  0x19   :  { %881 = shalt.err (!%p878_p10)
}
  0x1a   :  { %s882_s8 = scalar_lea.vmem %s971_s15, 1216  ;;  %p887_p12 = scmp.lt.s32.totalorder %s971_s15, %s971_s15 }
  0x1b   :  { %p883_p11 = scmp.ne.s32.totalorder %s971_s15, %s882_s8  ;;  %p888_p13 = scmp.lt.s32.totalorder %s882_s8, %s882_s8 }
  0x1d   :  { %p889_p0 = por %p888_p13, %p887_p12 }
  0x1f   :  { %p890_p1 = pnand %p889_p0, %p883_p11 }
  0x21   :  { %893 = shalt.err (!%p890_p1)
}
  0x22   :  { %22 = dma.hbm_to_vmem [thread:$0]  %s1067_s0, 1216, %s971_s15, [#allocation6], %s946_s24, %s946_s24, %s947_s25  }
  0x23   :  { %s948_s10 = smov [#allocation10]   ;;  %s894_s14 = scalar_lea.hbm %s1069_s2, 256 }
  0x24   :  { %s40_s11 = sshll.u32 %s948_s10, 4  ;;  %p895_p2 = scmp.ne.s32.totalorder %s1069_s2, %s894_s14  ;;  %s41_s11 = int_to_ptr.vmem [resolvable:$true] %s40_s11 }
  0x25   :  { %p898_p3 = scmp.lt.u32.totalorder %s894_s14, %s1069_s2 }
  0x27   :  { %p900_p4 = pnand %p898_p3, %p895_p2 }
  0x29   :  { %903 = shalt.err (!%p900_p4)
}
  0x2a   :  { %s904_s20 = scalar_lea.vmem %s41_s11, 256  ;;  %p909_p6 = scmp.lt.s32.totalorder %s41_s11, %s41_s11 }
  0x2b   :  { %p905_p5 = scmp.ne.s32.totalorder %s41_s11, %s904_s20  ;;  %p910_p7 = scmp.lt.s32.totalorder %s904_s20, %s904_s20 }
  0x2d   :  { %p911_p8 = por %p910_p7, %p909_p6 }
  0x2f   :  { %p912_p9 = pnand %p911_p8, %p905_p5 }
  0x31   :  { %915 = shalt.err (!%p912_p9)
}
  0x32   :  { %46 = dma.hbm_to_vmem [thread:$0]  %s1069_s2, 256, %s41_s11, [#allocation9], %s946_s24, %s946_s24, %s947_s25  }
  0x33   :  { %938 = dma.done.wait [#allocation6], 1216  }
  0x34   :  { %939 = vsyncadd [#allocation6], 4294966080 }
  0x35   :  { %940 = dma.done.wait [#allocation9], 512  }
  0x36   :  { %941 = vsyncadd [#allocation9], 4294966784  ;;  %v836_v0 = vld [vmem:[#allocation10] sm:$0xff]   ;;  %v837_v1 = vld [vmem:[#allocation8] sm:$0xff]   ;;  %vm151_vm0 = vcmask 261120   ;;  %v949_v34 = vmov 19.0  }
  0x37   :  { %765 = vmatprep.subr.bf16.mxu1 %v836_v0  ;;  %v838_v2 = vld [vmem:[#allocation10 + $0x8] sm:$0xff]   ;;  %789 = vmatprep.subr.bf16.mxu0 %v837_v1  ;;  %v839_v3 = vld [vmem:[#allocation8 + $0x8] sm:$0xff]   ;;  %s950_s2 = smov [#allocation11]  }
  0x38   :  { %766 = vmatpush3.bf16.msra.mxu1 %v836_v0  ;;  %790 = vmatpush3.bf16.msra.mxu0 %v837_v1  ;;  %v840_v4 = vld [vmem:[#allocation5] sm:$0xff]   ;;  %v841_v5 = vld [vmem:[#allocation5 + $0x8] sm:$0xff]   ;;  %v842_v6 = vld [vmem:[#allocation5 + $0x10] sm:$0xff]   ;;  %s697_s21 = sshll.u32 %s950_s2, 4  ;;  %s698_s21 = int_to_ptr.vmem [resolvable:$true] %s697_s21 }
  0x39   :  { %767 = vmatprep.subr.bf16.mxu1 %v838_v2  ;;  %791 = vmatprep.subr.bf16.mxu0 %v839_v3  ;;  %v843_v7 = vld [vmem:[#allocation5 + $0x18] sm:$0xff]   ;;  %v844_v8 = vld [vmem:[#allocation5 + $0x20] sm:$0xff]   ;;  %v845_v9 = vld [vmem:[#allocation5 + $0x28] sm:$0xff]   ;;  %s916_s22 = scalar_lea.vmem %s698_s21, 128  ;;  %p921_p11 = scmp.lt.s32.totalorder %s698_s21, %s698_s21 }
  0x3a   :  { %769 = vmatprep.mubr.msk.bf16.mxu1 %vm151_vm0, %v840_v4  ;;  %793 = vmatprep.mubr.msk.bf16.mxu0 %vm151_vm0, %v840_v4  ;;  %v846_v10 = vld [vmem:[#allocation5 + $0x30] sm:$0xff]   ;;  %v847_v11 = vld [vmem:[#allocation5 + $0x38] sm:$0xff]   ;;  %v848_v12 = vld [vmem:[#allocation5 + $0x40] sm:$0xff]   ;;  %p917_p10 = scmp.ne.s32.totalorder %s698_s21, %s916_s22  ;;  %p922_p12 = scmp.lt.s32.totalorder %s916_s22, %s916_s22 }
  0x3b   :  { %v849_v13 = vld [vmem:[#allocation5 + $0x48] ss:$0 sps:$4 sm:$0xff]  }
  0x3c   :  { %768 = vmatpush3.bf16.msra.mxu1 %v838_v2  ;;  %792 = vmatpush3.bf16.msra.mxu0 %v839_v3  ;;  %p923_p13 = por %p922_p12, %p921_p11 }
  0x3e   :  { %p924_p0 = pnand %p923_p13, %p917_p10 }
  0x3f   :  { %770 = vmatmul.mubr.msk.bf16.vlgmr.msra.gmra.mrb[0].mxu1 %vm151_vm0, %v841_v5  ;;  %794 = vmatmul.mubr.msk.bf16.vlgmr.msra.gmra.mrb[0].mxu0 %vm151_vm0, %v841_v5 }
  0x40   :  { %773 = vmatprep.mubr.msk.bf16.mxu1 %vm151_vm0, %v842_v6  ;;  %797 = vmatprep.mubr.msk.bf16.mxu0 %vm151_vm0, %v842_v6 }
  0x47   :  { %774 = vmatmul.mubr.msk.bf16.gmra.mrb[4].mxu1 %vm151_vm0, %v843_v7  ;;  %798 = vmatmul.mubr.msk.bf16.gmra.mrb[4].mxu0 %vm151_vm0, %v843_v7 }
  0x48   :  { %777 = vmatprep.mubr.msk.bf16.mxu1 %vm151_vm0, %v844_v8  ;;  %801 = vmatprep.mubr.msk.bf16.mxu0 %vm151_vm0, %v844_v8 }
  0x4f   :  { %778 = vmatmul.mubr.msk.bf16.gmra.mrb[8].mxu1 %vm151_vm0, %v845_v9  ;;  %802 = vmatmul.mubr.msk.bf16.gmra.mrb[8].mxu0 %vm151_vm0, %v845_v9 }
  0x50   :  { %781 = vmatprep.mubr.msk.bf16.mxu1 %vm151_vm0, %v846_v10  ;;  %805 = vmatprep.mubr.msk.bf16.mxu0 %vm151_vm0, %v846_v10 }
  0x57   :  { %782 = vmatmul.mubr.msk.bf16.gmra.mrb[12].mxu1 %vm151_vm0, %v847_v11  ;;  %806 = vmatmul.mubr.msk.bf16.gmra.mrb[12].mxu0 %vm151_vm0, %v847_v11 }
  0x58   :  { %785 = vmatprep.mubr.msk.bf16.mxu1 %vm151_vm0, %v848_v12  ;;  %809 = vmatprep.mubr.msk.bf16.mxu0 %vm151_vm0, %v848_v12 }
  0x5f   :  { %786 = vmatmul.mubr.msk.bf16.gmra.mrb[16].mxu1 %vm151_vm0, %v849_v13  ;;  %810 = vmatmul.mubr.msk.bf16.gmra.mrb[16].mxu0 %vm151_vm0, %v849_v13 }
 0x112   :  { %v771_v14 = vpop.f32.mrb[0].mxu1  ;;  %v795_v15 = vpop.f32.mrb[0].mxu0 }
 0x113   :  { %v216_v16 = vpop.f32.mrb[1].mxu1  ;;  %v349_v17 = vadd.f32 %v795_v15, %v771_v14  ;;  %v340_v18 = vpop.f32.mrb[1].mxu0 }
 0x114   :  { %v772_v19 = vpop.f32.mrb[2].mxu1  ;;  %v341_v20 = vadd.f32 %v340_v18, %v216_v16  ;;  %v796_v21 = vpop.f32.mrb[2].mxu0 }
 0x115   :  { %v219_v22 = vpop.f32.mrb[3].mxu1  ;;  %v352_v23 = vadd.f32 %v796_v21, %v772_v19  ;;  %v343_v24 = vpop.f32.mrb[3].mxu0 }
 0x116   :  { %v456_v25 = vmul.f32 0.05, %v341_v20  ;;  %v458_v26 = vmul.f32 0.8, %v341_v20  ;;  %v344_v27 = vadd.f32 %v343_v24, %v219_v22 }
 0x118   :  { %vm460_vm1 = vcmp.gt.f32.partialorder %v456_v25, 1.0  ;;  %v459_v28 = vadd.f32 %v458_v26, %v344_v27 }
 0x119   :  { %v461_v29 = vsel %vm460_vm1, 0.0, %v456_v25  ;;  %v466_v35 = vsel %vm460_vm1, 2.0, %v949_v34 }
 0x11a   :  { %v775_v30 = vpop.f32.mrb[4].mxu1  ;;  %v468_v31 = vmul.f32 0.95, %v461_v29  ;;  %v469_v32 = vmul.f32 0.05, %v459_v28  ;;  %v799_v36 = vpop.f32.mrb[4].mxu0 }
 0x11b   :  { %v471_v33 = vmul.f32 0.8, %v459_v28  ;;  %v232_v37 = vpop.f32.mrb[5].mxu1  ;;  %v365_v40 = vadd.f32 %v799_v36, %v775_v30  ;;  %v356_v41 = vpop.f32.mrb[5].mxu0  ;;  %v478_v46 = vmin.f32 %v466_v35, 3.0 }
 0x11c   :  { %v470_v38 = vadd.f32 %v469_v32, %v468_v31  ;;  %v776_v42 = vpop.f32.mrb[6].mxu1  ;;  %v357_v43 = vadd.f32 %v356_v41, %v232_v37  ;;  %v800_v44 = vpop.f32.mrb[6].mxu0 }
 0x11d   :  { %v472_v39 = vadd.f32 %v471_v33, %v349_v17  ;;  %v235_v45 = vpop.f32.mrb[7].mxu1  ;;  %v368_v48 = vadd.f32 %v800_v44, %v776_v42  ;;  %v359_v49 = vpop.f32.mrb[7].mxu0 }
 0x11e   :  { %vm473_vm2 = vcmp.gt.f32.partialorder %v470_v38, 1.0  ;;  %v360_v51 = vadd.f32 %v359_v49, %v235_v45 }
 0x11f   :  { %v484_v47 = vmul.f32 0.8, %v472_v39  ;;  %v474_v50 = vsel %vm473_vm2, 0.0, %v470_v38  ;;  %v479_v52 = vsel %vm473_vm2, %v478_v46, %v466_v35  ;;  %v482_v54 = vmul.f32 0.05, %v472_v39 }
 0x120   :  { %v481_v53 = vmul.f32 0.95, %v474_v50  ;;  %v491_v0 = vmin.f32 %v479_v52, 4.0 }
 0x121   :  { %v485_v55 = vadd.f32 %v484_v47, %v352_v23 }
 0x122   :  { %v779_v56 = vpop.f32.mrb[8].mxu1  ;;  %v483_v57 = vadd.f32 %v482_v54, %v481_v53  ;;  %v803_v59 = vpop.f32.mrb[8].mxu0 }
 0x123   :  { %v497_v58 = vmul.f32 0.8, %v485_v55  ;;  %v248_v60 = vpop.f32.mrb[9].mxu1  ;;  %v1043_v61 = vadd.f32 %v803_v59, %v779_v56  ;;  %v372_v62 = vpop.f32.mrb[9].mxu0  ;;  %v495_v10 = vmul.f32 0.05, %v485_v55 }
 0x124   :  { %v780_v63 = vpop.f32.mrb[10].mxu1  ;;  %vm486_vm3 = vcmp.gt.f32.partialorder %v483_v57, 1.0  ;;  %v373_v2 = vadd.f32 %v372_v62, %v248_v60  ;;  %v804_v3 = vpop.f32.mrb[10].mxu0 }
 0x125   :  { %v498_v1 = vadd.f32 %v497_v58, %v357_v43  ;;  %v251_v4 = vpop.f32.mrb[11].mxu1  ;;  %v487_v5 = vsel %vm486_vm3, 0.0, %v483_v57  ;;  %v1045_v6 = vadd.f32 %v804_v3, %v780_v63  ;;  %v375_v7 = vpop.f32.mrb[11].mxu0  ;;  %v492_v8 = vsel %vm486_vm3, %v491_v0, %v479_v52 }
 0x126   :  { %v494_v9 = vmul.f32 0.95, %v487_v5  ;;  %v376_v12 = vadd.f32 %v375_v7, %v251_v4  ;;  %v504_v16 = vmin.f32 %v492_v8, 5.0 }
 0x127   :  { %v510_v11 = vmul.f32 0.8, %v498_v1  ;;  %v508_v25 = vmul.f32 0.05, %v498_v1 }
 0x128   :  { %v496_v13 = vadd.f32 %v495_v10, %v494_v9 }
 0x129   :  { %v511_v14 = vadd.f32 %v510_v11, %v360_v51 }
 0x12a   :  { %v783_v15 = vpop.f32.mrb[12].mxu1  ;;  %vm499_vm4 = vcmp.gt.f32.partialorder %v496_v13, 1.0  ;;  %v807_v18 = vpop.f32.mrb[12].mxu0 }
 0x12b   :  { %v523_v17 = vmul.f32 0.8, %v511_v14  ;;  %v500_v19 = vsel %vm499_vm4, 0.0, %v496_v13  ;;  %v1047_v20 = vadd.f32 %v807_v18, %v783_v15  ;;  %v264_v21 = vpop.f32.mrb[13].mxu1  ;;  %v388_v22 = vpop.f32.mrb[13].mxu0  ;;  %v505_v23 = vsel %vm499_vm4, %v504_v16, %v492_v8 }
 0x12c   :  { %v507_v24 = vmul.f32 0.95, %v500_v19  ;;  %v389_v27 = vadd.f32 %v388_v22, %v264_v21  ;;  %v784_v28 = vpop.f32.mrb[14].mxu1  ;;  %v808_v29 = vpop.f32.mrb[14].mxu0  ;;  %v517_v36 = vmin.f32 %v505_v23, 6.0 }
 0x12d   :  { %v524_v26 = vadd.f32 %v523_v17, %v365_v40  ;;  %v1049_v30 = vadd.f32 %v808_v29, %v784_v28  ;;  %v267_v31 = vpop.f32.mrb[15].mxu1  ;;  %v391_v32 = vpop.f32.mrb[15].mxu0  ;;  %v521_v43 = vmul.f32 0.05, %v511_v14 }
 0x12e   :  { %v509_v33 = vadd.f32 %v508_v25, %v507_v24  ;;  %v392_v35 = vadd.f32 %v391_v32, %v267_v31 }
 0x12f   :  { %v536_v34 = vmul.f32 0.8, %v524_v26  ;;  %v534_v60 = vmul.f32 0.05, %v524_v26 }
 0x130   :  { %vm512_vm5 = vcmp.gt.f32.partialorder %v509_v33, 1.0 }
 0x131   :  { %v537_v37 = vadd.f32 %v536_v34, %v368_v48  ;;  %v513_v38 = vsel %vm512_vm5, 0.0, %v509_v33  ;;  %v518_v41 = vsel %vm512_vm5, %v517_v36, %v505_v23 }
 0x132   :  { %v787_v39 = vpop.f32.mrb[16].mxu1  ;;  %v520_v42 = vmul.f32 0.95, %v513_v38  ;;  %v811_v40 = vpop.f32.mrb[16].mxu0  ;;  %v530_v54 = vmin.f32 %v518_v41, 7.0 }
 0x133   :  { %v549_v44 = vmul.f32 0.8, %v537_v37  ;;  %v280_v45 = vpop.f32.mrb[17].mxu1  ;;  %v404_v49 = vpop.f32.mrb[17].mxu0  ;;  %v547_v7 = vmul.f32 0.05, %v537_v37 }
 0x134   :  { %v522_v46 = vadd.f32 %v521_v43, %v520_v42  ;;  %v788_v50 = vpop.f32.mrb[18].mxu1  ;;  %v405_v51 = vadd.f32 %v404_v49, %v280_v45  ;;  %v812_v52 = vpop.f32.mrb[18].mxu0 }
 0x135   :  { %v550_v47 = vadd.f32 %v549_v44, %v373_v2  ;;  %v283_v53 = vpop.f32.mrb[19].mxu1  ;;  %v407_v56 = vpop.f32.mrb[19].mxu0 }
 0x136   :  { %vm525_vm6 = vcmp.gt.f32.partialorder %v522_v46, 1.0  ;;  %v408_v57 = vadd.f32 %v407_v56, %v283_v53 }
 0x137   :  { %v562_v55 = vmul.f32 0.8, %v550_v47  ;;  %v526_v48 = vsel %vm525_vm6, 0.0, %v522_v46  ;;  %v531_v58 = vsel %vm525_vm6, %v530_v54, %v518_v41  ;;  %v560_v16 = vmul.f32 0.05, %v550_v47 }
 0x138   :  { %v533_v59 = vmul.f32 0.95, %v526_v48  ;;  %v543_v1 = vmin.f32 %v531_v58, 8.0 }
 0x139   :  { %v563_v62 = vadd.f32 %v562_v55, %v376_v12 }
 0x13a   :  { %v535_v63 = vadd.f32 %v534_v60, %v533_v59 }
 0x13b   :  { %v575_v0 = vmul.f32 0.8, %v563_v62  ;;  %v573_v25 = vmul.f32 0.05, %v563_v62 }
 0x13c   :  { %vm538_vm7 = vcmp.gt.f32.partialorder %v535_v63, 1.0 }
 0x13d   :  { %v576_v2 = vadd.f32 %v575_v0, %v1043_v61  ;;  %v539_v3 = vsel %vm538_vm7, 0.0, %v535_v63  ;;  %v544_v4 = vsel %vm538_vm7, %v543_v1, %v531_v58 }
 0x13e   :  { %v546_v5 = vmul.f32 0.95, %v539_v3  ;;  %v556_v11 = vmin.f32 %v544_v4, 9.0 }
 0x13f   :  { %v588_v8 = vmul.f32 0.8, %v576_v2 }
 0x140   :  { %v548_v9 = vadd.f32 %v547_v7, %v546_v5 }
 0x141   :  { %v589_v10 = vadd.f32 %v588_v8, %v1045_v6 }
 0x142   :  { %vm551_vm8 = vcmp.gt.f32.partialorder %v548_v9, 1.0 }
 0x143   :  { %v601_v13 = vmul.f32 0.8, %v589_v10  ;;  %v552_v14 = vsel %vm551_vm8, 0.0, %v548_v9  ;;  %v557_v15 = vsel %vm551_vm8, %v556_v11, %v544_v4  ;;  %v599_v44 = vmul.f32 0.05, %v589_v10 }
 0x144   :  { %v559_v12 = vmul.f32 0.95, %v552_v14  ;;  %v569_v21 = vmin.f32 %v557_v15, 10.0 }
 0x145   :  { %v602_v17 = vadd.f32 %v601_v13, %v389_v27  ;;  %v586_v27 = vmul.f32 0.05, %v576_v2 }
 0x146   :  { %v561_v18 = vadd.f32 %v560_v16, %v559_v12 }
 0x147   :  { %v614_v19 = vmul.f32 0.8, %v602_v17  ;;  %v612_v52 = vmul.f32 0.05, %v602_v17 }
 0x148   :  { %vm564_vm9 = vcmp.gt.f32.partialorder %v561_v18, 1.0 }
 0x149   :  { %v615_v61 = vadd.f32 %v614_v19, %v392_v35  ;;  %v565_v22 = vsel %vm564_vm9, 0.0, %v561_v18  ;;  %v570_v23 = vsel %vm564_vm9, %v569_v21, %v557_v15 }
 0x14a   :  { %v572_v24 = vmul.f32 0.95, %v565_v22  ;;  %v582_v29 = vmin.f32 %v570_v23, 11.0 }
 0x14b   :  { %v627_v26 = vmul.f32 0.8, %v615_v61 }
 0x14c   :  { %v574_v28 = vadd.f32 %v573_v25, %v572_v24 }
 0x14d   :  { %v628_v6 = vadd.f32 %v627_v26, %v1047_v20 }
 0x14e   :  { %vm577_vm10 = vcmp.gt.f32.partialorder %v574_v28, 1.0 }
 0x14f   :  { %v640_v31 = vmul.f32 0.8, %v628_v6  ;;  %v578_v32 = vsel %vm577_vm10, 0.0, %v574_v28  ;;  %v583_v33 = vsel %vm577_vm10, %v582_v29, %v570_v23 }
 0x150   :  { %v585_v34 = vmul.f32 0.95, %v578_v32  ;;  %v595_v35 = vmin.f32 %v583_v33, 12.0 }
 0x151   :  { %v641_v36 = vadd.f32 %v640_v31, %v1049_v30 }
 0x152   :  { %v587_v37 = vadd.f32 %v586_v27, %v585_v34 }
 0x153   :  { %v653_v38 = vmul.f32 0.8, %v641_v36  ;;  %v651_v4 = vmul.f32 0.05, %v641_v36 }
 0x154   :  { %vm590_vm11 = vcmp.gt.f32.partialorder %v587_v37, 1.0 }
 0x155   :  { %v654_v39 = vadd.f32 %v653_v38, %v405_v51  ;;  %v591_v41 = vsel %vm590_vm11, 0.0, %v587_v37  ;;  %v596_v42 = vsel %vm590_vm11, %v595_v35, %v583_v33  ;;  %v625_v51 = vmul.f32 0.05, %v615_v61 }
 0x156   :  { %v598_v43 = vmul.f32 0.95, %v591_v41  ;;  %v608_v46 = vmin.f32 %v596_v42, 13.0 }
 0x157   :  { %v666_v40 = vmul.f32 0.8, %v654_v39  ;;  %v664_v11 = vmul.f32 0.05, %v654_v39 }
 0x158   :  { %v600_v20 = vadd.f32 %v599_v44, %v598_v43 }
 0x159   :  { %v667_v45 = vadd.f32 %v666_v40, %v408_v57  ;;  %v638_v57 = vmul.f32 0.05, %v628_v6 }
 0x15a   :  { %vm603_vm12 = vcmp.gt.f32.partialorder %v600_v20, 1.0 }
 0x15b   :  { %v604_v47 = vsel %vm603_vm12, 0.0, %v600_v20  ;;  %v609_v49 = vsel %vm603_vm12, %v608_v46, %v596_v42  ;;  %v677_v17 = vmul.f32 0.05, %v667_v45 }
 0x15c   :  { %v611_v50 = vmul.f32 0.95, %v604_v47  ;;  %v621_v30 = vmin.f32 %v609_v49, 14.0 }
 0x15e   :  { %v613_v53 = vadd.f32 %v612_v52, %v611_v50 }
 0x160   :  { %vm616_vm13 = vcmp.gt.f32.partialorder %v613_v53, 1.0 }
 0x161   :  { %v617_v54 = vsel %vm616_vm13, 0.0, %v613_v53  ;;  %v622_v55 = vsel %vm616_vm13, %v621_v30, %v609_v49 }
 0x162   :  { %v624_v56 = vmul.f32 0.95, %v617_v54  ;;  %v634_v58 = vmin.f32 %v622_v55, 15.0 }
 0x164   :  { %v626_v48 = vadd.f32 %v625_v51, %v624_v56 }
 0x166   :  { %vm629_vm14 = vcmp.gt.f32.partialorder %v626_v48, 1.0 }
 0x167   :  { %v630_v59 = vsel %vm629_vm14, 0.0, %v626_v48  ;;  %v635_v60 = vsel %vm629_vm14, %v634_v58, %v622_v55 }
 0x168   :  { %v637_v62 = vmul.f32 0.95, %v630_v59  ;;  %v647_v0 = vmin.f32 %v635_v60, 16.0 }
 0x16a   :  { %v639_v63 = vadd.f32 %v638_v57, %v637_v62 }
 0x16c   :  { %vm642_vm15 = vcmp.gt.f32.partialorder %v639_v63, 1.0 }
 0x16d   :  { %v643_v1 = vsel %vm642_vm15, 0.0, %v639_v63  ;;  %v648_v2 = vsel %vm642_vm15, %v647_v0, %v635_v60 }
 0x16e   :  { %v650_v3 = vmul.f32 0.95, %v643_v1  ;;  %v660_v7 = vmin.f32 %v648_v2, 17.0 }
 0x170   :  { %v652_v5 = vadd.f32 %v651_v4, %v650_v3 }
 0x172   :  { %vm655_vm0 = vcmp.gt.f32.partialorder %v652_v5, 1.0 }
 0x173   :  { %v656_v8 = vsel %vm655_vm0, 0.0, %v652_v5  ;;  %v661_v9 = vsel %vm655_vm0, %v660_v7, %v648_v2 }
 0x174   :  { %v663_v10 = vmul.f32 0.95, %v656_v8  ;;  %v673_v14 = vmin.f32 %v661_v9, 18.0 }
 0x176   :  { %v665_v13 = vadd.f32 %v664_v11, %v663_v10 }
 0x178   :  { %vm668_vm1 = vcmp.gt.f32.partialorder %v665_v13, 1.0 }
 0x179   :  { %v669_v15 = vsel %vm668_vm1, 0.0, %v665_v13  ;;  %v674_v12 = vsel %vm668_vm1, %v673_v14, %v661_v9 }
 0x17a   :  { %v676_v16 = vmul.f32 0.95, %v669_v15  ;;  %v686_v19 = vmin.f32 %v674_v12, 19.0 }
 0x17c   :  { %v678_v18 = vadd.f32 %v677_v17, %v676_v16 }
 0x17e   :  { %vm681_vm2 = vcmp.gt.f32.partialorder %v678_v18, 1.0 }
 0x17f   :  { %v687_v21 = vsel %vm681_vm2, %v686_v19, %v674_v12 }
 0x180   :  { %690 = vst [vmem:[#allocation11] sm:$0xff] %v687_v21 }
 0x181   :  { %927 = shalt.err (!%p924_p0)
}
 0x182   :  { %s928_s25 = scalar_lea.hbm %s1070_s3, 128 }
 0x183   :  { %p929_p1 = scmp.ne.s32.totalorder %s1070_s3, %s928_s25  ;;  %p932_p2 = scmp.lt.u32.totalorder %s928_s25, %s1070_s3 }
 0x185   :  { %p934_p3 = pnand %p932_p2, %p929_p1 }
 0x187   :  { %937 = shalt.err (!%p934_p3)
}
 0x188   :  { %700 = dma.vmem_to_hbm [thread:$0]  %s698_s21, 128, %s1070_s3, [#allocation7]  }
 0x189   :  { %942 = dma.done.wait [#allocation7], 128  }
 0x18a   :  { %943 = vsyncadd [#allocation7], 4294967168 }
 0x18b   :  { %704 = vsyncpa [#allocation6], 1 }
 0x18c   :  { %705 = vsyncpa [#allocation9], 1 }
 0x18d   :  { %706 = vsyncpa [#allocation7], 1 }

</bundles_post_ra>
